<compile_context>
chip_gen: v7x
topology: tpu7x:2x2x1
jax: 0.10.0
libtpu: 0.0.40
codegen_flags: <defaults>
</compile_context>

<pallas_src>
import functools

import jax
import jax.numpy as jnp
from jax.experimental import pallas as pl
from jax.experimental.pallas import tpu as pltpu

PAD = 128  # lane-aligned padded output width; real outputs live in lanes [:2]


# ----------------------------------------------------------------------------
# Kernel: one fused matmul + bias for a (TILE_M, input_size) row block.
# ----------------------------------------------------------------------------
def _fused_kernel(x_ref, w_ref, b_ref, out_ref):
    # x_ref : (TILE_M, input_size)   input rows
    # w_ref : (input_size, PAD)      folded affine chain, real data in [:, :2]
    # b_ref : (1, PAD)               folded bias, real data in [0, :2]
    # out_ref: (TILE_M, PAD)         lane-dense output (unmasked stores)
    out_ref[...] = (
        jnp.dot(x_ref[...], w_ref[...], preferred_element_type=jnp.float32)
        + b_ref[...]
    )


# ----------------------------------------------------------------------------
# One-time parameter folding / padding (hoisted out of the per-call path).
# ----------------------------------------------------------------------------
def prepare_params(params):
    """Fold Linear(in,5) -> [Linear(5,5)]*L -> Linear(5,2) (all affine, no
    nonlinearity in the module) into a single padded weight/bias pair.

    Torch layout: weight = (out_features, in_features), y = x @ W.T + b.
    """
    w1, b1, wm, bm, wo, bo = params

    W = w1.T.astype(jnp.float32)                 # (input_size, 5)
    b = b1.astype(jnp.float32)                   # (5,)
    for i in range(wm.shape[0]):
        Wi = wm[i].T.astype(jnp.float32)         # (5, 5)
        W = W @ Wi
        b = b @ Wi + bm[i].astype(jnp.float32)
    Wo = wo.T.astype(jnp.float32)                # (5, 2)
    W = W @ Wo                                   # (input_size, 2)
    b = b @ Wo + bo.astype(jnp.float32)          # (2,)

    input_size = W.shape[0]
    w_p = jnp.zeros((input_size, PAD), jnp.float32).at[:, :2].set(W)
    b_p = jnp.zeros((1, PAD), jnp.float32).at[0, :2].set(b)
    return (w_p, b_p)


# ----------------------------------------------------------------------------
# Forward path.
# ----------------------------------------------------------------------------
def _choose_tile_m(M):
    # 256 rows fill the v6e/v7x 2x256^2 MXU; 128 already saturates v5e's
    # 4x128^2.  For small batches just round up to the f32 sublane (8).
    if M >= 256:
        return 256
    return max(8, ((M + 7) // 8) * 8)


@jax.jit
def _forward_padded(xb, w_p, b_p):
    """xb: (M, input_size) rows; returns padded (M_padded, PAD) output.
    Callers slice [:M, :2] lazily (keeps the kernel store lane-dense)."""
    M, input_size = xb.shape
    tile_m = _choose_tile_m(M)
    mp = ((M + tile_m - 1) // tile_m) * tile_m
    if mp != M:
        xb = jnp.pad(xb, ((0, mp - M), (0, 0)))
    grid_m = mp // tile_m

    cost = pl.CostEstimate(
        flops=2 * mp * input_size * PAD,
        transcendentals=0,
        bytes_accessed=4 * (mp * input_size + input_size * PAD + PAD + mp * PAD),
    )

    return pl.pallas_call(
        _fused_kernel,
        out_shape=jax.ShapeDtypeStruct((mp, PAD), jnp.float32),
        grid=(grid_m,),
        in_specs=[
            pl.BlockSpec((tile_m, input_size), lambda i: (i, 0)),
            pl.BlockSpec((input_size, PAD), lambda i: (0, 0)),  # weight resident
            pl.BlockSpec((1, PAD), lambda i: (0, 0)),           # bias resident
        ],
        out_specs=pl.BlockSpec((tile_m, PAD), lambda i: (i, 0)),
        compiler_params=pltpu.CompilerParams(
            dimension_semantics=("parallel",)),   # v7x: split M grid across TCs
        cost_estimate=cost,
    )(xb, w_p, b_p)


def test_net_pallas(x, packed_params):
    """Faithful module forward: x.view(-1) -> affine chain; returns (2,)."""
    xr = x.reshape(1, -1).astype(jnp.float32)
    return _forward_padded(xr, *packed_params)[0, :2]


def test_net_pallas_batched(xs, packed_params):
    """xs: (B, input_size) independent flattened samples in one call."""
    B = xs.shape[0]
    return _forward_padded(xs.astype(jnp.float32), *packed_params)[:B, :2]


# ----------------------------------------------------------------------------
# Pure-JAX layer-by-layer reference (mirrors the PyTorch module exactly).
# ----------------------------------------------------------------------------
def _reference(x, params):
    w1, b1, wm, bm, wo, bo = params
    h = x.reshape(-1).astype(jnp.float32)
    h = h @ w1.T + b1
    for i in range(wm.shape[0]):
        h = h @ wm[i].T + bm[i]
    return h @ wo.T + bo


def _reference_batched(xs, params):
    w1, b1, wm, bm, wo, bo = params
    h = xs.astype(jnp.float32) @ w1.T + b1
    for i in range(wm.shape[0]):
        h = h @ wm[i].T + bm[i]
    return h @ wo.T + bo


def _init_params(key, num_layers, input_size):
    """Deterministic init mirroring nn.Linear shapes (weight = (out, in))."""
    ks = jax.random.split(key, 2 * (num_layers + 2))
    k = iter(ks)

    def linear(out_f, in_f):
        bound = 1.0 / jnp.sqrt(in_f)
        w = jax.random.uniform(next(k), (out_f, in_f), jnp.float32, -bound, bound)
        b = jax.random.uniform(next(k), (out_f,), jnp.float32, -bound, bound)
        return w, b

    w1, b1 = linear(5, input_size)
    wm, bm = [], []
    for _ in range(num_layers):
        w, b = linear(5, 5)
        wm.append(w)
        bm.append(b)
    wo, bo = linear(2, 5)
    return (w1, b1, jnp.stack(wm), jnp.stack(bm), wo, bo)


if __name__ == "__main__":
    num_layers = 3
    # x.view(-1) requires prod(x.shape) == input_size
    x_shape = (2, 4, 16)        # flattens to 128
    input_size = 2 * 4 * 16     # 128

    key = jax.random.PRNGKey(0)
    kx, kp, kb, kc = jax.random.split(key, 4)
    x = jax.random.normal(kx, x_shape, jnp.float32)
    params = _init_params(kp, num_layers, input_size)

    # one-time offline folding + padding of the affine chain
    packed = prepare_params(params)

    # single-sample forward (exact module semantics, shape (2,))
    out = jax.block_until_ready(test_net_pallas(x, packed))
    ref = _reference(x, params)
    assert out.shape == (2,)
    assert jnp.allclose(out, ref, atol=1e-4, rtol=1e-4), (out, ref)

    # small batch: 16 independent samples in one kernel call (single tile)
    xs = jax.random.normal(kb, (16, input_size), jnp.float32)
    outs = jax.block_until_ready(test_net_pallas_batched(xs, packed))
    refs = _reference_batched(xs, params)
    assert outs.shape == (16, 2)
    assert jnp.allclose(outs, refs, atol=1e-4, rtol=1e-4), (outs, refs)

    # larger, non-multiple-of-tile batch: exercises row padding + the
    # parallel M grid (300 -> padded 512, two 256-row tiles)
    xl = jax.random.normal(kc, (300, input_size), jnp.float32)
    outl = jax.block_until_ready(test_net_pallas_batched(xl, packed))
    refl = _reference_batched(xl, params)
    assert outl.shape == (300, 2)
    assert jnp.allclose(outl, refl, atol=1e-4, rtol=1e-4), (outl, refl)

    print("KERNEL_OK")
</pallas_src>

<mosaic_0001>
module attributes {stable_mosaic.version = 11 : i64} {
  func.func @_fused_kernel(%arg0: i32, %arg1: memref<8x128xf32, #tpu.memory_space<vmem>>, %arg2: memref<128x128xf32, #tpu.memory_space<vmem>>, %arg3: memref<1x128xf32, #tpu.memory_space<vmem>>, %arg4: memref<8x128xf32, #tpu.memory_space<vmem>>) attributes {dimension_semantics = [#tpu.dimension_semantics<parallel>], iteration_bounds = array<i64: 1>, scalar_prefetch = 0 : i64, scratch_operands = 0 : i64, tpu.core_type = #tpu.core_type<tc>, window_params = [{transform_indices = @transform_0, window_bounds = array<i64: 8, 128>}, {pipeline_mode = #tpu.pipeline_mode<synchronous>, transform_indices = @transform_1, window_bounds = array<i64: 128, 128>}, {pipeline_mode = #tpu.pipeline_mode<synchronous>, transform_indices = @transform_2, window_bounds = array<i64: 1, 128>}, {transform_indices = @transform_3, window_bounds = array<i64: 8, 128>}]} {
    %c0 = arith.constant 0 : index
    %c0_0 = arith.constant 0 : index
    %0 = vector.load %arg1[%c0, %c0_0] : memref<8x128xf32, #tpu.memory_space<vmem>>, vector<8x128xf32>
    %c0_1 = arith.constant 0 : index
    %c0_2 = arith.constant 0 : index
    %1 = vector.load %arg2[%c0_1, %c0_2] : memref<128x128xf32, #tpu.memory_space<vmem>>, vector<128x128xf32>
    %cst = arith.constant dense<0.000000e+00> : vector<8x128xf32>
    %2 = tpu.matmul %0, %1, %cst {dimension_numbers = #tpu.dot_dimension_numbers<[1], [0], [0], [1], [0, 0, 1, 1], [], []>} : vector<8x128xf32>, vector<128x128xf32>, vector<8x128xf32> -> vector<8x128xf32>
    %c0_3 = arith.constant 0 : index
    %c0_4 = arith.constant 0 : index
    %3 = vector.load %arg3[%c0_3, %c0_4] : memref<1x128xf32, #tpu.memory_space<vmem>>, vector<1x128xf32>
    %4 = vector.broadcast %3 : vector<1x128xf32> to vector<8x128xf32>
    %5 = arith.addf %2, %4 : vector<8x128xf32>
    %c0_5 = arith.constant 0 : index
    %c0_6 = arith.constant 0 : index
    %6 = vector.load %arg4[%c0_5, %c0_6] : memref<8x128xf32, #tpu.memory_space<vmem>>, vector<8x128xf32>
    tpu.vector_store %arg4[%c0_5, %c0_6], %5 {strides = array<i32>} : memref<8x128xf32, #tpu.memory_space<vmem>>, vector<8x128xf32>,
    return
  }
  func.func @transform_0(%arg0: i32) -> (i32, i32) {
    %c0_i32 = arith.constant 0 : i32
    %c0_i32_0 = arith.constant 0 : i32
    return %arg0, %c0_i32 : i32, i32
  }
  func.func @transform_1(%arg0: i32) -> (i32, i32) {
    %c0_i32 = arith.constant 0 : i32
    %c0_i32_0 = arith.constant 0 : i32
    %c0_i32_1 = arith.constant 0 : i32
    return %c0_i32, %c0_i32_0 : i32, i32
  }
  func.func @transform_2(%arg0: i32) -> (i32, i32) {
    %c0_i32 = arith.constant 0 : i32
    %c0_i32_0 = arith.constant 0 : i32
    %c0_i32_1 = arith.constant 0 : i32
    return %c0_i32, %c0_i32_0 : i32, i32
  }
  func.func @transform_3(%arg0: i32) -> (i32, i32) {
    %c0_i32 = arith.constant 0 : i32
    %c0_i32_0 = arith.constant 0 : i32
    return %arg0, %c0_i32 : i32, i32
  }
}

</mosaic_0001>

<bundles_post_ra>
// kernel: _forward_padded.1
= control target key start
LH: loop header
LB: loop body
LE: loop exit
PB: predicated region body
PF: predicated region fallthrough
CT: control target
= control target key end

     0   :  { %8 = vsyncpa [#allocation3], 0  ;;  %s328_s0 = inlined_call_operand.vmem [shape: f32[8,128], index: 0, kind: input, shape index: {}]   ;;  %s329_s1 = inlined_call_operand.hbm [shape: f32[128,128], index: 1, kind: input, shape index: {}]   ;;  %s330_s2 = inlined_call_operand.vmem [shape: f32[1,128], index: 2, kind: input, shape index: {}]   ;;  %s331_s3 = inlined_call_operand.hbm [shape: f32[8,128], index: 3, kind: output, shape index: {}]  }
   0x1   :  { %9 = vsyncpa [#allocation4], 0  ;;  %s271_s12 = smov [#allocation2]   ;;  %s223_s16 = scalar_lea.hbm %s329_s1, 2048 }
   0x2   :  { %s17_s13 = sshll.u32 %s271_s12, 4  ;;  %p224_p0 = scmp.ne.s32.totalorder %s329_s1, %s223_s16  ;;  %s18_s13 = int_to_ptr.vmem [resolvable:$true] %s17_s13 }
   0x3   :  { %p227_p1 = scmp.lt.u32.totalorder %s223_s16, %s329_s1 }
   0x5   :  { %p229_p2 = pnand %p227_p1, %p224_p0 }
   0x7   :  { %232 = shalt.err (!%p229_p2)
}
   0x8   :  { %s233_s21 = scalar_lea.vmem %s18_s13, 2048  ;;  %p238_p4 = scmp.lt.s32.totalorder %s18_s13, %s18_s13 }
   0x9   :  { %p234_p3 = scmp.ne.s32.totalorder %s18_s13, %s233_s21  ;;  %p239_p5 = scmp.lt.s32.totalorder %s233_s21, %s233_s21 }
   0xb   :  { %p240_p6 = por %p239_p5, %p238_p4 }
   0xd   :  { %p241_p7 = pnand %p240_p6, %p234_p3 }
   0xf   :  { %244 = shalt.err (!%p241_p7)
}
  0x10   :  { %s272_s22 = smov 128   ;;  %s273_s23 = smov 8  }
  0x11   :  { %23 = dma.hbm_to_vmem [thread:$0]  %s329_s1, 2048, %s18_s13, [#allocation3], %s272_s22, %s272_s22, %s273_s23  }
  0x12   :  { %267 = dma.done.wait [#allocation3], 2048  }
  0x13   :  { %268 = vsyncadd [#allocation3], 4294965248  ;;  %v274_v0 = vmov 0.0|0.0   ;;  %vm275_vm0 = vmmov 0   ;;  %v276_v1 = vmov 0.0   ;;  %v30_v2 = vld [vmem:[#allocation2] sm:$0xff] }
  0x14   :  { %192 = vmatprep.subr.bf16.mxu0 %v274_v0  ;;  %189 = vmatprep.mubr.msk.f32.mxu0 %vm275_vm0, %v276_v1  ;;  %v31_v3 = vld [vmem:[#allocation2 + $0x8] sm:$0xff]  ;;  %v32_v4 = vld [vmem:[#allocation2 + $0x10] sm:$0xff]  ;;  %v33_v6 = vld [vmem:[#allocation2 + $0x18] sm:$0xff]  ;;  %s277_s29 = smov [#allocation5]  }
  0x15   :  { %v193_v5 = vpack.c.bf16 %v31_v3, %v30_v2  ;;  %v196_v7 = vpack.c.bf16 %v33_v6, %v32_v4  ;;  %v34_v8 = vld [vmem:[#allocation2 + $0x20] sm:$0xff]  ;;  %v35_v9 = vld [vmem:[#allocation2 + $0x28] sm:$0xff]  ;;  %v36_v11 = vld [vmem:[#allocation2 + $0x30] sm:$0xff]  ;;  %s130_s30 = sshll.u32 %s277_s29, 4  ;;  %s131_s30 = int_to_ptr.vmem [resolvable:$true] %s130_s30 }
  0x16   :  { %v199_v10 = vpack.c.bf16 %v35_v9, %v34_v8  ;;  %v37_v12 = vld [vmem:[#allocation2 + $0x38] sm:$0xff]  ;;  %v38_v14 = vld [vmem:[#allocation2 + $0x40] sm:$0xff]  ;;  %v39_v15 = vld [vmem:[#allocation2 + $0x48] sm:$0xff]  ;;  %s245_s4 = scalar_lea.vmem %s131_s30, 128  ;;  %p250_p9 = scmp.lt.s32.totalorder %s131_s30, %s131_s30 }
  0x17   :  { %194 = vmatpush3.bf16.msra.mxu0 %v193_v5  ;;  %v202_v13 = vpack.c.bf16 %v37_v12, %v36_v11  ;;  %v205_v16 = vpack.c.bf16 %v39_v15, %v38_v14  ;;  %v40_v17 = vld [vmem:[#allocation2 + $0x50] sm:$0xff]  ;;  %v41_v18 = vld [vmem:[#allocation2 + $0x58] sm:$0xff]  ;;  %v42_v20 = vld [vmem:[#allocation2 + $0x60] sm:$0xff]  ;;  %p246_p8 = scmp.ne.s32.totalorder %s131_s30, %s245_s4  ;;  %p251_p10 = scmp.lt.s32.totalorder %s245_s4, %s245_s4 }
  0x18   :  { %195 = vmatprep.subr.bf16.mxu0 %v274_v0  ;;  %v208_v19 = vpack.c.bf16 %v41_v18, %v40_v17  ;;  %v43_v21 = vld [vmem:[#allocation2 + $0x68] sm:$0xff]  ;;  %v44_v23 = vld [vmem:[#allocation2 + $0x70] sm:$0xff]  ;;  %v45_v24 = vld [vmem:[#allocation2 + $0x78] sm:$0xff] }
  0x19   :  { %v211_v22 = vpack.c.bf16 %v43_v21, %v42_v20  ;;  %v214_v25 = vpack.c.bf16 %v45_v24, %v44_v23  ;;  %v29_v26 = vld [vmem:[%s328_s0] sm:$0xff]  ;;  %p252_p11 = por %p251_p10, %p250_p9 }
  0x1a   :  { %v139_v27 = vld [vmem:[%s330_s2] ss:$0 sm:$0xff] }
  0x1b   :  { %197 = vmatpush3.bf16.msra.mxu0 %v196_v7  ;;  %p253_p12 = pnand %p252_p11, %p246_p8 }
  0x1c   :  { %198 = vmatprep.subr.bf16.mxu0 %v274_v0 }
  0x1f   :  { %200 = vmatpush3.bf16.msra.mxu0 %v199_v10 }
  0x20   :  { %201 = vmatprep.subr.bf16.mxu0 %v274_v0 }
  0x23   :  { %203 = vmatpush3.bf16.msra.mxu0 %v202_v13 }
  0x24   :  { %204 = vmatprep.subr.bf16.mxu0 %v274_v0 }
  0x27   :  { %206 = vmatpush3.bf16.msra.mxu0 %v205_v16 }
  0x28   :  { %207 = vmatprep.subr.bf16.mxu0 %v274_v0 }
  0x2b   :  { %209 = vmatpush3.bf16.msra.mxu0 %v208_v19 }
  0x2c   :  { %210 = vmatprep.subr.bf16.mxu0 %v274_v0 }
  0x2f   :  { %212 = vmatpush3.bf16.msra.mxu0 %v211_v22 }
  0x30   :  { %213 = vmatprep.subr.bf16.mxu0 %v274_v0 }
  0x33   :  { %215 = vmatpush3.bf16.msra.mxu0 %v214_v25 }
  0x36   :  { %190 = vmatmul.mubr.f32.vlgmr.msra.gmra.mrb[0].mxu0 %v29_v26 }
 0x109   :  { %v119_v28 = vpop.f32.mrb[0].mxu0 }
 0x10a   :  { %v120_v29 = vadd.f32 %v139_v27, %v119_v28  ;;  %v191_v30 = vpop.f32.mrb[1].mxu0 }
 0x10c   :  { %123 = vst [vmem:[#allocation5] sm:$0xff] %v120_v29 }
 0x10d   :  { %256 = shalt.err (!%p253_p12)
}
 0x10e   :  { %s257_s6 = scalar_lea.hbm %s331_s3, 128 }
 0x10f   :  { %p258_p13 = scmp.ne.s32.totalorder %s331_s3, %s257_s6  ;;  %p261_p0 = scmp.lt.u32.totalorder %s257_s6, %s331_s3 }
 0x111   :  { %p263_p1 = pnand %p261_p0, %p258_p13 }
 0x113   :  { %266 = shalt.err (!%p263_p1)
}
 0x114   :  { %133 = dma.vmem_to_hbm [thread:$0]  %s131_s30, 128, %s331_s3, [#allocation4]  }
 0x115   :  { %269 = dma.done.wait [#allocation4], 128  }
 0x116   :  { %270 = vsyncadd [#allocation4], 4294967168 }
 0x117   :  { %137 = vsyncpa [#allocation3], 1 }
 0x118   :  { %138 = vsyncpa [#allocation4], 1 }

</bundles_post_ra>
